<compile_context>
chip_gen: v7x
topology: tpu7x:2x2x1
jax: 0.10.0
libtpu: 0.0.40
codegen_flags: <defaults>
</compile_context>

<pallas_src>
import math
import jax
import jax.numpy as jnp
from jax.experimental import pallas as pl
from jax.experimental.pallas import tpu as pltpu


def rnn_kernel(xw_ref, whh_ref, h_out_ref, h_scratch):
    """One grid step == one (batch block, time chunk).

    xw_ref   : (TT, TB, H)  precomputed x @ W_ih^T + (b_ih + b_hh) for this chunk
    whh_ref  : (H, H)       W_hh^T
    h_out_ref: (TB, H)      last hidden state (written on the final time chunk)
    h_scratch: (TB, H) f32  VMEM hidden-state carry across time chunks
    """
    t_chunk = pl.program_id(1)

    # Reset the carried hidden state at the first time chunk of every batch block
    # (time is the innermost grid axis, so this fires once per batch block).
    @pl.when(t_chunk == 0)
    def _():
        h_scratch[...] = jnp.zeros_like(h_scratch)

    whh = whh_ref[...]            # (H, H), loaded once per chunk
    h = h_scratch[...]            # (TB, H)

    # Fully unrolled serial recurrence over the chunk (TT is a small static int):
    # per step: one (TB, H) @ (H, H) MXU matmul + VPU add + EUP tanh.
    for i in range(xw_ref.shape[0]):
        pre = xw_ref[i] + jnp.dot(h, whh, preferred_element_type=jnp.float32)
        h = jnp.tanh(pre)

    h_scratch[...] = h

    @pl.when(t_chunk == pl.num_programs(1) - 1)
    def _():
        h_out_ref[...] = h.astype(h_out_ref.dtype)


def _pick_time_chunk(T, target=32):
    """Largest divisor of T that is <= target (falls back to T)."""
    if T <= target:
        return T
    for tt in range(target, 0, -1):
        if T % tt == 0:
            return tt
    return T


def rnn_forward(x, params, *, time_chunk=None):
    """x: (B, T, 1) float32 -> y: (B, 1) float32  (matches the PyTorch module forward)."""
    w_ih, w_hh, b_ih, b_hh, w_l2, b_l2 = params
    B, T, _ = x.shape
    H = w_hh.shape[0]

    TT = time_chunk if time_chunk is not None else _pick_time_chunk(T)
    if T % TT != 0:
        TT = T
    num_chunks = T // TT

    # Single batch block at this size; the leading "parallel" grid axis is kept so larger
    # batches can be sharded across v7x's two TensorCores by sub-blocking TB.
    TB = B
    num_b = B // TB

    # --- hoisted input projection (off the serial critical path) ---------------------
    # input_size == 1, so x @ W_ih^T == x * W_ih^T (broadcast).  Shape: (T, B, H).
    x_tm = jnp.transpose(x, (1, 0, 2)).astype(jnp.float32)              # (T, B, 1)
    wih_t = jnp.reshape(w_ih, (1, 1, H)).astype(jnp.float32)            # (1, 1, H)
    bias = jnp.reshape(b_ih + b_hh, (1, 1, H)).astype(jnp.float32)      # (1, 1, H)
    xw = x_tm * wih_t + bias                                            # (T, B, H)

    whh_t = jnp.transpose(w_hh, (1, 0)).astype(jnp.float32)             # (H, H) = W_hh^T

    grid_spec = pltpu.PrefetchScalarGridSpec(
        num_scalar_prefetch=0,
        grid=(num_b, num_chunks),                       # time (reduction) axis last
        in_specs=[
            pl.BlockSpec((TT, TB, H), lambda b, t: (t, b, 0)),   # xw chunk
            pl.BlockSpec((H, H), lambda b, t: (0, 0)),           # W_hh^T (resident)
        ],
        out_specs=pl.BlockSpec((TB, H), lambda b, t: (b, 0)),    # h_last per batch block
        scratch_shapes=[pltpu.VMEM((TB, H), jnp.float32)],
    )

    h_last = pl.pallas_call(
        rnn_kernel,
        out_shape=jax.ShapeDtypeStruct((B, H), jnp.float32),
        grid_spec=grid_spec,
        compiler_params=pltpu.CompilerParams(
            dimension_semantics=("parallel", "arbitrary"),  # batch parallel, time sequential
        ),
    )(xw, whh_t)

    # Tiny output head (H -> 1) on the kernel's lane-dense h_last output.
    y = h_last @ jnp.transpose(w_l2).astype(jnp.float32) + b_l2.astype(jnp.float32)
    return y


def init_params(key, hidden_dim):
    H = hidden_dim
    k1, k2, k3, k4, k5, k6 = jax.random.split(key, 6)

    # xavier_normal_ on W_ih (H, 1): std = sqrt(2 / (fan_in + fan_out))
    std = math.sqrt(2.0 / (1 + H))
    w_ih = jax.random.normal(k1, (H, 1), dtype=jnp.float32) * std

    # orthogonal_ on W_hh (H, H): QR of a Gaussian, sign-fixed
    a = jax.random.normal(k2, (H, H), dtype=jnp.float32)
    q, r = jnp.linalg.qr(a)
    w_hh = q * jnp.sign(jnp.diagonal(r))[None, :]

    # PyTorch default RNN / Linear bias & weight init: U(-1/sqrt(H), 1/sqrt(H))
    bound = 1.0 / math.sqrt(H)
    b_ih = jax.random.uniform(k3, (H,), minval=-bound, maxval=bound, dtype=jnp.float32)
    b_hh = jax.random.uniform(k4, (H,), minval=-bound, maxval=bound, dtype=jnp.float32)
    w_l2 = jax.random.uniform(k5, (1, H), minval=-bound, maxval=bound, dtype=jnp.float32)
    b_l2 = jax.random.uniform(k6, (1,), minval=-bound, maxval=bound, dtype=jnp.float32)

    return (w_ih, w_hh, b_ih, b_hh, w_l2, b_l2)


def rnn_forward_ref(x, params):
    """Pure-JAX reference (lax.scan) for correctness check."""
    w_ih, w_hh, b_ih, b_hh, w_l2, b_l2 = params
    B = x.shape[0]
    H = w_hh.shape[0]
    x_tm = jnp.transpose(x, (1, 0, 2))   # (T, B, 1)

    def step(h, x_t):
        h_new = jnp.tanh(x_t @ w_ih.T + h @ w_hh.T + b_ih + b_hh)
        return h_new, None

    h0 = jnp.zeros((B, H), jnp.float32)
    h_last, _ = jax.lax.scan(step, h0, x_tm)
    return h_last @ w_l2.T + b_l2


if __name__ == "__main__":
    B, T, H = 4, 8, 32
    key = jax.random.PRNGKey(0)
    k_x, k_p = jax.random.split(key)

    x = jax.random.normal(k_x, (B, T, 1), dtype=jnp.float32)
    params = init_params(k_p, H)

    y = jax.block_until_ready(rnn_forward(x, params))
    y_ref = jax.block_until_ready(rnn_forward_ref(x, params))

    assert y.shape == (B, 1)
    assert jnp.allclose(y, y_ref, atol=1e-5, rtol=1e-5)

    print("KERNEL_OK")
</pallas_src>

<mosaic_0001>
module attributes {stable_mosaic.version = 11 : i64} {
  func.func @rnn_kernel(%arg0: i32, %arg1: i32, %arg2: memref<8x4x32xf32, #tpu.memory_space<vmem>>, %arg3: memref<32x32xf32, #tpu.memory_space<vmem>>, %arg4: memref<4x32xf32, #tpu.memory_space<vmem>>, %arg5: memref<4x32xf32, #tpu.memory_space<vmem>>) attributes {dimension_semantics = [#tpu.dimension_semantics<parallel>, #tpu.dimension_semantics<arbitrary>], iteration_bounds = array<i64: 1, 1>, scalar_prefetch = 0 : i64, scratch_operands = 1 : i64, tpu.core_type = #tpu.core_type<tc>, window_params = [{transform_indices = @transform_0, window_bounds = array<i64: 8, 4, 32>}, {pipeline_mode = #tpu.pipeline_mode<synchronous>, transform_indices = @transform_1, window_bounds = array<i64: 32, 32>}, {transform_indices = @transform_2, window_bounds = array<i64: 4, 32>}]} {
    %c0_i32 = arith.constant 0 : i32
    %0 = arith.cmpi eq, %arg1, %c0_i32 : i32
    %1 = arith.extui %0 : i1 to i32
    %c0_i32_0 = arith.constant 0 : i32
    %2 = arith.cmpi ne, %1, %c0_i32_0 : i32
    scf.if %2 {
      %cst_32 = arith.constant 0.000000e+00 : f32
      %49 = vector.broadcast %cst_32 : f32 to vector<4x32xf32>
      %c0_33 = arith.constant 0 : index
      %c0_34 = arith.constant 0 : index
      %50 = vector.load %arg5[%c0_33, %c0_34] : memref<4x32xf32, #tpu.memory_space<vmem>>, vector<4x32xf32>
      tpu.vector_store %arg5[%c0_33, %c0_34], %49 {strides = array<i32>} : memref<4x32xf32, #tpu.memory_space<vmem>>, vector<4x32xf32>,
    } else {
    }
    %c0 = arith.constant 0 : index
    %c0_1 = arith.constant 0 : index
    %3 = vector.load %arg3[%c0, %c0_1] : memref<32x32xf32, #tpu.memory_space<vmem>>, vector<32x32xf32>
    %c0_2 = arith.constant 0 : index
    %c0_3 = arith.constant 0 : index
    %4 = vector.load %arg5[%c0_2, %c0_3] : memref<4x32xf32, #tpu.memory_space<vmem>>, vector<4x32xf32>
    %c0_4 = arith.constant 0 : index
    %c0_5 = arith.constant 0 : index
    %c0_6 = arith.constant 0 : index
    %5 = vector.load %arg2[%c0_4, %c0_5, %c0_6] : memref<8x4x32xf32, #tpu.memory_space<vmem>>, vector<1x4x32xf32>
    %6 = vector.shape_cast %5 : vector<1x4x32xf32> to vector<4x32xf32>
    %cst = arith.constant dense<0.000000e+00> : vector<4x32xf32>
    %7 = tpu.matmul %4, %3, %cst {dimension_numbers = #tpu.dot_dimension_numbers<[1], [0], [0], [1], [0, 0, 1, 1], [], []>} : vector<4x32xf32>, vector<32x32xf32>, vector<4x32xf32> -> vector<4x32xf32>
    %8 = arith.addf %6, %7 : vector<4x32xf32>
    %9 = math.tanh %8 : vector<4x32xf32>
    %c1 = arith.constant 1 : index
    %c0_7 = arith.constant 0 : index
    %c0_8 = arith.constant 0 : index
    %10 = vector.load %arg2[%c1, %c0_7, %c0_8] : memref<8x4x32xf32, #tpu.memory_space<vmem>>, vector<1x4x32xf32>
    %11 = vector.shape_cast %10 : vector<1x4x32xf32> to vector<4x32xf32>
    %cst_9 = arith.constant dense<0.000000e+00> : vector<4x32xf32>
    %12 = tpu.matmul %9, %3, %cst_9 {dimension_numbers = #tpu.dot_dimension_numbers<[1], [0], [0], [1], [0, 0, 1, 1], [], []>} : vector<4x32xf32>, vector<32x32xf32>, vector<4x32xf32> -> vector<4x32xf32>
    %13 = arith.addf %11, %12 : vector<4x32xf32>
    %14 = math.tanh %13 : vector<4x32xf32>
    %c2 = arith.constant 2 : index
    %c0_10 = arith.constant 0 : index
    %c0_11 = arith.constant 0 : index
    %15 = vector.load %arg2[%c2, %c0_10, %c0_11] : memref<8x4x32xf32, #tpu.memory_space<vmem>>, vector<1x4x32xf32>
    %16 = vector.shape_cast %15 : vector<1x4x32xf32> to vector<4x32xf32>
    %cst_12 = arith.constant dense<0.000000e+00> : vector<4x32xf32>
    %17 = tpu.matmul %14, %3, %cst_12 {dimension_numbers = #tpu.dot_dimension_numbers<[1], [0], [0], [1], [0, 0, 1, 1], [], []>} : vector<4x32xf32>, vector<32x32xf32>, vector<4x32xf32> -> vector<4x32xf32>
    %18 = arith.addf %16, %17 : vector<4x32xf32>
    %19 = math.tanh %18 : vector<4x32xf32>
    %c3 = arith.constant 3 : index
    %c0_13 = arith.constant 0 : index
    %c0_14 = arith.constant 0 : index
    %20 = vector.load %arg2[%c3, %c0_13, %c0_14] : memref<8x4x32xf32, #tpu.memory_space<vmem>>, vector<1x4x32xf32>
    %21 = vector.shape_cast %20 : vector<1x4x32xf32> to vector<4x32xf32>
    %cst_15 = arith.constant dense<0.000000e+00> : vector<4x32xf32>
    %22 = tpu.matmul %19, %3, %cst_15 {dimension_numbers = #tpu.dot_dimension_numbers<[1], [0], [0], [1], [0, 0, 1, 1], [], []>} : vector<4x32xf32>, vector<32x32xf32>, vector<4x32xf32> -> vector<4x32xf32>
    %23 = arith.addf %21, %22 : vector<4x32xf32>
    %24 = math.tanh %23 : vector<4x32xf32>
    %c4 = arith.constant 4 : index
    %c0_16 = arith.constant 0 : index
    %c0_17 = arith.constant 0 : index
    %25 = vector.load %arg2[%c4, %c0_16, %c0_17] : memref<8x4x32xf32, #tpu.memory_space<vmem>>, vector<1x4x32xf32>
    %26 = vector.shape_cast %25 : vector<1x4x32xf32> to vector<4x32xf32>
    %cst_18 = arith.constant dense<0.000000e+00> : vector<4x32xf32>
    %27 = tpu.matmul %24, %3, %cst_18 {dimension_numbers = #tpu.dot_dimension_numbers<[1], [0], [0], [1], [0, 0, 1, 1], [], []>} : vector<4x32xf32>, vector<32x32xf32>, vector<4x32xf32> -> vector<4x32xf32>
    %28 = arith.addf %26, %27 : vector<4x32xf32>
    %29 = math.tanh %28 : vector<4x32xf32>
    %c5 = arith.constant 5 : index
    %c0_19 = arith.constant 0 : index
    %c0_20 = arith.constant 0 : index
    %30 = vector.load %arg2[%c5, %c0_19, %c0_20] : memref<8x4x32xf32, #tpu.memory_space<vmem>>, vector<1x4x32xf32>
    %31 = vector.shape_cast %30 : vector<1x4x32xf32> to vector<4x32xf32>
    %cst_21 = arith.constant dense<0.000000e+00> : vector<4x32xf32>
    %32 = tpu.matmul %29, %3, %cst_21 {dimension_numbers = #tpu.dot_dimension_numbers<[1], [0], [0], [1], [0, 0, 1, 1], [], []>} : vector<4x32xf32>, vector<32x32xf32>, vector<4x32xf32> -> vector<4x32xf32>
    %33 = arith.addf %31, %32 : vector<4x32xf32>
    %34 = math.tanh %33 : vector<4x32xf32>
    %c6 = arith.constant 6 : index
    %c0_22 = arith.constant 0 : index
    %c0_23 = arith.constant 0 : index
    %35 = vector.load %arg2[%c6, %c0_22, %c0_23] : memref<8x4x32xf32, #tpu.memory_space<vmem>>, vector<1x4x32xf32>
    %36 = vector.shape_cast %35 : vector<1x4x32xf32> to vector<4x32xf32>
    %cst_24 = arith.constant dense<0.000000e+00> : vector<4x32xf32>
    %37 = tpu.matmul %34, %3, %cst_24 {dimension_numbers = #tpu.dot_dimension_numbers<[1], [0], [0], [1], [0, 0, 1, 1], [], []>} : vector<4x32xf32>, vector<32x32xf32>, vector<4x32xf32> -> vector<4x32xf32>
    %38 = arith.addf %36, %37 : vector<4x32xf32>
    %39 = math.tanh %38 : vector<4x32xf32>
    %c7 = arith.constant 7 : index
    %c0_25 = arith.constant 0 : index
    %c0_26 = arith.constant 0 : index
    %40 = vector.load %arg2[%c7, %c0_25, %c0_26] : memref<8x4x32xf32, #tpu.memory_space<vmem>>, vector<1x4x32xf32>
    %41 = vector.shape_cast %40 : vector<1x4x32xf32> to vector<4x32xf32>
    %cst_27 = arith.constant dense<0.000000e+00> : vector<4x32xf32>
    %42 = tpu.matmul %39, %3, %cst_27 {dimension_numbers = #tpu.dot_dimension_numbers<[1], [0], [0], [1], [0, 0, 1, 1], [], []>} : vector<4x32xf32>, vector<32x32xf32>, vector<4x32xf32> -> vector<4x32xf32>
    %43 = arith.addf %41, %42 : vector<4x32xf32>
    %44 = math.tanh %43 : vector<4x32xf32>
    %c0_28 = arith.constant 0 : index
    %c0_29 = arith.constant 0 : index
    %45 = vector.load %arg5[%c0_28, %c0_29] : memref<4x32xf32, #tpu.memory_space<vmem>>, vector<4x32xf32>
    tpu.vector_store %arg5[%c0_28, %c0_29], %44 {strides = array<i32>} : memref<4x32xf32, #tpu.memory_space<vmem>>, vector<4x32xf32>,
    %c0_i32_30 = arith.constant 0 : i32
    %46 = arith.cmpi eq, %arg1, %c0_i32_30 : i32
    %47 = arith.extui %46 : i1 to i32
    %c0_i32_31 = arith.constant 0 : i32
    %48 = arith.cmpi ne, %47, %c0_i32_31 : i32
    scf.if %48 {
      %c0_32 = arith.constant 0 : index
      %c0_33 = arith.constant 0 : index
      %49 = vector.load %arg4[%c0_32, %c0_33] : memref<4x32xf32, #tpu.memory_space<vmem>>, vector<4x32xf32>
      tpu.vector_store %arg4[%c0_32, %c0_33], %44 {strides = array<i32>} : memref<4x32xf32, #tpu.memory_space<vmem>>, vector<4x32xf32>,
    } else {
    }
    return
  }
  func.func @transform_0(%arg0: i32, %arg1: i32) -> (i32, i32, i32) {
    %c0_i32 = arith.constant 0 : i32
    %c0_i32_0 = arith.constant 0 : i32
    return %arg1, %arg0, %c0_i32 : i32, i32, i32
  }
  func.func @transform_1(%arg0: i32, %arg1: i32) -> (i32, i32) {
    %c0_i32 = arith.constant 0 : i32
    %c0_i32_0 = arith.constant 0 : i32
    %c0_i32_1 = arith.constant 0 : i32
    return %c0_i32, %c0_i32_0 : i32, i32
  }
  func.func @transform_2(%arg0: i32, %arg1: i32) -> (i32, i32) {
    %c0_i32 = arith.constant 0 : i32
    %c0_i32_0 = arith.constant 0 : i32
    return %arg0, %c0_i32 : i32, i32
  }
}

</mosaic_0001>

<bundles_post_ra>
// kernel: tpu_custom_call.1
= control target key start
LH: loop header
LB: loop body
LE: loop exit
PB: predicated region body
PF: predicated region fallthrough
CT: control target
= control target key end

     0   :  { %7 = vsyncpa [#allocation4], 0  ;;  %s1096_s0 = inlined_call_operand.hbm [shape: f32[8,4,32], index: 0, kind: input, shape index: {}]   ;;  %s1097_s1 = inlined_call_operand.hbm [shape: f32[32,32], index: 1, kind: input, shape index: {}]   ;;  %s1098_s2 = inlined_call_operand.hbm [shape: f32[4,32], index: 2, kind: output, shape index: {}]  }
   0x1   :  { %8 = vsyncpa [#allocation7], 0 }
   0x2   :  { %9 = vsyncpa [#allocation5], 0  ;;  %s971_s9 = smov [#allocation3]   ;;  %s899_s13 = scalar_lea.hbm %s1096_s0, 512 }
   0x3   :  { %s15_s10 = sshll.u32 %s971_s9, 4  ;;  %p900_p0 = scmp.ne.s32.totalorder %s1096_s0, %s899_s13  ;;  %s16_s10 = int_to_ptr.vmem [resolvable:$true] %s15_s10 }
   0x4   :  { %p903_p1 = scmp.lt.u32.totalorder %s899_s13, %s1096_s0 }
   0x6   :  { %p905_p2 = pnand %p903_p1, %p900_p0 }
   0x8   :  { %908 = shalt.err (!%p905_p2)
}
   0x9   :  { %s909_s18 = scalar_lea.vmem %s16_s10, 512  ;;  %p914_p4 = scmp.lt.s32.totalorder %s16_s10, %s16_s10 }
   0xa   :  { %p910_p3 = scmp.ne.s32.totalorder %s16_s10, %s909_s18  ;;  %p915_p5 = scmp.lt.s32.totalorder %s909_s18, %s909_s18 }
   0xc   :  { %p916_p6 = por %p915_p5, %p914_p4 }
   0xe   :  { %p917_p7 = pnand %p916_p6, %p910_p3 }
  0x10   :  { %920 = shalt.err (!%p917_p7)
}
  0x11   :  { %s972_s19 = smov 64   ;;  %s973_s20 = smov 4  }
  0x12   :  { %21 = dma.hbm_to_vmem [thread:$0]  %s1096_s0, 512, %s16_s10, [#allocation4], %s972_s19, %s972_s19, %s973_s20  }
  0x13   :  { %s974_s23 = smov [#allocation6]   ;;  %s921_s27 = scalar_lea.hbm %s1097_s1, 512 }
  0x14   :  { %s27_s24 = sshll.u32 %s974_s23, 4  ;;  %p922_p8 = scmp.ne.s32.totalorder %s1097_s1, %s921_s27  ;;  %s28_s24 = int_to_ptr.vmem [resolvable:$true] %s27_s24 }
  0x15   :  { %p925_p9 = scmp.lt.u32.totalorder %s921_s27, %s1097_s1 }
  0x17   :  { %p927_p10 = pnand %p925_p9, %p922_p8 }
  0x19   :  { %930 = shalt.err (!%p927_p10)
}
  0x1a   :  { %s931_s4 = scalar_lea.vmem %s28_s24, 512  ;;  %p936_p12 = scmp.lt.s32.totalorder %s28_s24, %s28_s24 }
  0x1b   :  { %p932_p11 = scmp.ne.s32.totalorder %s28_s24, %s931_s4  ;;  %p937_p13 = scmp.lt.s32.totalorder %s931_s4, %s931_s4 }
  0x1d   :  { %p938_p0 = por %p937_p13, %p936_p12 }
  0x1f   :  { %p939_p1 = pnand %p938_p0, %p932_p11 }
  0x21   :  { %942 = shalt.err (!%p939_p1)
}
  0x22   :  { %s975_s0 = smov 128   ;;  %s976_s5 = smov 8  }
  0x23   :  { %33 = dma.hbm_to_vmem [thread:$0]  %s1097_s1, 512, %s28_s24, [#allocation7], %s975_s0, %s975_s0, %s976_s5  }
  0x24   :  { %965 = dma.done.wait [#allocation4], 512  }
  0x25   :  { %966 = vsyncadd [#allocation4], 4294966784 }
  0x26   :  { %967 = dma.done.wait [#allocation7], 512  }
  0x27   :  { %968 = vsyncadd [#allocation7], 4294966784  ;;  %vm44_vm0 = vcmask 257024   ;;  %v977_v0 = vmov 0.0|0.0   ;;  %vm978_vm1 = vmmov 0   ;;  %v979_v1 = vmov 0.0  }
  0x28   :  { %825 = vmatprep.subr.bf16.mxu0 %v977_v0  ;;  %745 = vmatprep.mubr.msk.f32.mxu0 %vm978_vm1, %v979_v1  ;;  %45 = vst.msk [vmem:[#allocation2] sm:$0xf] %vm44_vm0, %v979_v1  ;;  %v46_v2 = vld [vmem:[#allocation6] sm:$0xff]  ;;  %v47_v3 = vld [vmem:[#allocation6 + $0x8] sm:$0xff]  ;;  %v48_v4 = vld [vmem:[#allocation6 + $0x10] sm:$0xff]  ;;  %vm52_vm2 = vcmask 261120  }
  0x29   :  { %831 = vmatprep.subr.bf16.mxu1 %v977_v0  ;;  %756 = vmatprep.mubr.msk.f32.mxu1 %vm978_vm1, %v979_v1  ;;  %v1028_v5 = vpack.c.bf16 %v47_v3, %v46_v2  ;;  %v49_v6 = vld [vmem:[#allocation6 + $0x18] sm:$0xff]  ;;  %v51_v9 = vld [vmem:[#allocation3] sm:$0xf]  ;;  %v129_v14 = vld [vmem:[#allocation3 + $0x4] sm:$0xf]  ;;  %s980_s1 = smov [#allocation8]  }
  0x2a   :  { %v1031_v7 = vpack.c.bf16 %v49_v6, %v48_v4  ;;  %v206_v19 = vld [vmem:[#allocation3 + $0x8] sm:$0xf]  ;;  %v283_v24 = vld [vmem:[#allocation3 + $0xc] sm:$0xf]  ;;  %v360_v29 = vld [vmem:[#allocation3 + $0x10] sm:$0xf] }
  0x2b   :  { %827 = vmatpush3.bf16.msra.mxu0 %v1028_v5  ;;  %833 = vmatpush3.bf16.msra.mxu1 %v1028_v5  ;;  %v437_v34 = vld [vmem:[#allocation3 + $0x14] sm:$0xf]  ;;  %v514_v39 = vld [vmem:[#allocation3 + $0x18] sm:$0xf]  ;;  %v591_v44 = vld [vmem:[#allocation3 + $0x1c] sm:$0xf] }
  0x2c   :  { %828 = vmatprep.subr.bf16.mxu0 %v977_v0  ;;  %834 = vmatprep.subr.bf16.mxu1 %v977_v0  ;;  %s679_s8 = sshll.u32 %s980_s1, 4  ;;  %s680_s8 = int_to_ptr.vmem [resolvable:$true] %s679_s8 }
  0x2d   :  { %s943_s9 = scalar_lea.vmem %s680_s8, 64  ;;  %p948_p3 = scmp.lt.s32.totalorder %s680_s8, %s680_s8 }
  0x2e   :  { %p944_p2 = scmp.ne.s32.totalorder %s680_s8, %s943_s9  ;;  %p949_p4 = scmp.lt.s32.totalorder %s943_s9, %s943_s9 }
  0x2f   :  { %830 = vmatpush3.bf16.msra.mxu0 %v1031_v7  ;;  %v50_v8 = vld [vmem:[#allocation2] sm:$0xf]  ;;  %836 = vmatpush3.bf16.msra.mxu1 %v1031_v7 }
  0x30   :  { %837 = vmatprep.subr.bf16.mxu0 %v977_v0  ;;  %843 = vmatprep.subr.bf16.mxu1 %v977_v0  ;;  %p950_p5 = por %p949_p4, %p948_p3 }
  0x32   :  { %746 = vmatmul.mubr.msk.f32.vlgmr.msra.gmra.mrb[0].mxu0 %vm52_vm2, %v50_v8  ;;  %p951_p6 = pnand %p950_p5, %p944_p2 }
  0x33   :  { %839 = vmatpush3.bf16.msra.mxu0 %v1028_v5  ;;  %767 = vmatprep.mubr.msk.f32.mxu0 %vm978_vm1, %v979_v1 }
  0x34   :  { %840 = vmatprep.subr.bf16.mxu0 %v977_v0 }
  0x37   :  { %842 = vmatpush3.bf16.msra.mxu0 %v1031_v7 }
  0x38   :  { %849 = vmatprep.subr.bf16.mxu0 %v977_v0 }
 0x105   :  { %v122_v10 = vpop.f32.mrb[0].mxu0 }
 0x106   :  { %v126_v11 = vadd.f32 %v122_v10, %v51_v9  ;;  %v747_v12 = vpop.f32.mrb[1].mxu0 }
 0x108   :  { %883 = vtanh.f32 %v126_v11 }
 0x112   :  { %v884_v13 = vpop.eup %883 }
 0x113   :  { %757 = vmatmul.mubr.msk.f32.vlgmr.msra.gmra.mrb[0].mxu1 %vm52_vm2, %v884_v13 }
 0x114   :  { %845 = vmatpush3.bf16.msra.mxu1 %v1028_v5  ;;  %778 = vmatprep.mubr.msk.f32.mxu1 %vm978_vm1, %v979_v1 }
 0x115   :  { %846 = vmatprep.subr.bf16.mxu1 %v977_v0 }
 0x118   :  { %848 = vmatpush3.bf16.msra.mxu1 %v1031_v7 }
 0x119   :  { %855 = vmatprep.subr.bf16.mxu1 %v977_v0 }
 0x1e6   :  { %v199_v15 = vpop.f32.mrb[0].mxu1 }
 0x1e7   :  { %v203_v16 = vadd.f32 %v199_v15, %v129_v14  ;;  %v758_v17 = vpop.f32.mrb[1].mxu1 }
 0x1e9   :  { %885 = vtanh.f32 %v203_v16 }
 0x1f3   :  { %v886_v18 = vpop.eup %885 }
 0x1f4   :  { %768 = vmatmul.mubr.msk.f32.vlgmr.msra.gmra.mrb[2].mxu0 %vm52_vm2, %v886_v18 }
 0x1f5   :  { %851 = vmatpush3.bf16.msra.mxu0 %v1028_v5  ;;  %789 = vmatprep.mubr.msk.f32.mxu0 %vm978_vm1, %v979_v1 }
 0x1f6   :  { %852 = vmatprep.subr.bf16.mxu0 %v977_v0 }
 0x1f9   :  { %854 = vmatpush3.bf16.msra.mxu0 %v1031_v7 }
 0x1fa   :  { %861 = vmatprep.subr.bf16.mxu0 %v977_v0 }
 0x2c7   :  { %v276_v20 = vpop.f32.mrb[2].mxu0 }
 0x2c8   :  { %v280_v21 = vadd.f32 %v276_v20, %v206_v19  ;;  %v769_v22 = vpop.f32.mrb[3].mxu0 }
 0x2ca   :  { %887 = vtanh.f32 %v280_v21 }
 0x2d4   :  { %v888_v23 = vpop.eup %887 }
 0x2d5   :  { %779 = vmatmul.mubr.msk.f32.vlgmr.msra.gmra.mrb[2].mxu1 %vm52_vm2, %v888_v23 }
 0x2d6   :  { %857 = vmatpush3.bf16.msra.mxu1 %v1028_v5  ;;  %800 = vmatprep.mubr.msk.f32.mxu1 %vm978_vm1, %v979_v1 }
 0x2d7   :  { %858 = vmatprep.subr.bf16.mxu1 %v977_v0 }
 0x2da   :  { %860 = vmatpush3.bf16.msra.mxu1 %v1031_v7 }
 0x2db   :  { %867 = vmatprep.subr.bf16.mxu1 %v977_v0 }
 0x3a8   :  { %v353_v25 = vpop.f32.mrb[2].mxu1 }
 0x3a9   :  { %v357_v26 = vadd.f32 %v353_v25, %v283_v24  ;;  %v780_v27 = vpop.f32.mrb[3].mxu1 }
 0x3ab   :  { %889 = vtanh.f32 %v357_v26 }
 0x3b5   :  { %v890_v28 = vpop.eup %889 }
 0x3b6   :  { %790 = vmatmul.mubr.msk.f32.vlgmr.msra.gmra.mrb[4].mxu0 %vm52_vm2, %v890_v28 }
 0x3b7   :  { %863 = vmatpush3.bf16.msra.mxu0 %v1028_v5  ;;  %811 = vmatprep.mubr.msk.f32.mxu0 %vm978_vm1, %v979_v1 }
 0x3b8   :  { %864 = vmatprep.subr.bf16.mxu0 %v977_v0 }
 0x3bb   :  { %866 = vmatpush3.bf16.msra.mxu0 %v1031_v7 }
 0x489   :  { %v430_v30 = vpop.f32.mrb[4].mxu0 }
 0x48a   :  { %v434_v31 = vadd.f32 %v430_v30, %v360_v29  ;;  %v791_v32 = vpop.f32.mrb[5].mxu0 }
 0x48c   :  { %891 = vtanh.f32 %v434_v31 }
 0x496   :  { %v892_v33 = vpop.eup %891 }
 0x497   :  { %801 = vmatmul.mubr.msk.f32.vlgmr.msra.gmra.mrb[4].mxu1 %vm52_vm2, %v892_v33 }
 0x498   :  { %869 = vmatpush3.bf16.msra.mxu1 %v1028_v5  ;;  %822 = vmatprep.mubr.msk.f32.mxu1 %vm978_vm1, %v979_v1 }
 0x499   :  { %870 = vmatprep.subr.bf16.mxu1 %v977_v0 }
 0x49c   :  { %872 = vmatpush3.bf16.msra.mxu1 %v1031_v7 }
 0x56a   :  { %v507_v35 = vpop.f32.mrb[4].mxu1 }
 0x56b   :  { %v511_v36 = vadd.f32 %v507_v35, %v437_v34  ;;  %v802_v37 = vpop.f32.mrb[5].mxu1 }
 0x56d   :  { %893 = vtanh.f32 %v511_v36 }
 0x577   :  { %v894_v38 = vpop.eup %893 }
 0x578   :  { %812 = vmatmul.mubr.msk.f32.vlgmr.msra.gmra.mrb[6].mxu0 %vm52_vm2, %v894_v38 }
 0x64b   :  { %v584_v40 = vpop.f32.mrb[6].mxu0 }
 0x64c   :  { %v588_v41 = vadd.f32 %v584_v40, %v514_v39  ;;  %v813_v42 = vpop.f32.mrb[7].mxu0 }
 0x64e   :  { %895 = vtanh.f32 %v588_v41 }
 0x658   :  { %v896_v43 = vpop.eup %895 }
 0x659   :  { %823 = vmatmul.mubr.msk.f32.vlgmr.msra.gmra.mrb[6].mxu1 %vm52_vm2, %v896_v43 }
 0x72c   :  { %v661_v45 = vpop.f32.mrb[6].mxu1 }
 0x72d   :  { %v665_v46 = vadd.f32 %v661_v45, %v591_v44  ;;  %v824_v47 = vpop.f32.mrb[7].mxu1 }
 0x72f   :  { %897 = vtanh.f32 %v665_v46 }
 0x739   :  { %v898_v48 = vpop.eup %897 }
 0x73a   :  { %668 = vst.msk [vmem:[#allocation2] sm:$0xf] %vm44_vm0, %v898_v48  ;;  %672 = vst.msk [vmem:[#allocation8] sm:$0xf] %vm44_vm0, %v898_v48 }
 0x73b   :  { %954 = shalt.err (!%p951_p6)
}
 0x73c   :  { %s955_s12 = scalar_lea.hbm %s1098_s2, 64 }
 0x73d   :  { %p956_p7 = scmp.ne.s32.totalorder %s1098_s2, %s955_s12  ;;  %p959_p8 = scmp.lt.u32.totalorder %s955_s12, %s1098_s2 }
 0x73f   :  { %p961_p9 = pnand %p959_p8, %p956_p7 }
 0x741   :  { %964 = shalt.err (!%p961_p9)
}
 0x742   :  { %682 = dma.vmem_to_hbm [thread:$0]  %s680_s8, 64, %s1098_s2, [#allocation5]  }
 0x743   :  { %969 = dma.done.wait [#allocation5], 64  }
 0x744   :  { %970 = vsyncadd [#allocation5], 4294967232 }
 0x745   :  { %686 = vsyncpa [#allocation4], 1 }
 0x746   :  { %687 = vsyncpa [#allocation7], 1 }
 0x747   :  { %688 = vsyncpa [#allocation5], 1 }

</bundles_post_ra>
